<compile_context>
chip_gen: v7x
topology: tpu7x:2x2x1
jax: 0.10.0
libtpu: 0.0.40
codegen_flags: <defaults>
</compile_context>

<pallas_src>
import jax
import jax.numpy as jnp
from jax.experimental import pallas as pl
from jax.experimental.pallas import tpu as pltpu

MARGIN = 1.0  # train_args.margin for the 'mr' (MarginRankingLoss) loss


def rr_forward_kernel(pos_ref, neg_ref, w_ref, b_ref, out_ref):
    # pos_ref / neg_ref: (B_tile, H) first-token hidden states.
    # w_ref: (1, H) LinearHead weight row (f32).  b_ref: (1,) bias in SMEM.
    # out_ref: (3, B_tile) lane-dense output [pos_score; neg_score; hinge].
    w = w_ref[...].astype(pos_ref.dtype)        # multiply in the hidden dtype
    bias = b_ref[0]                             # scalar read from SMEM

    # LinearHead(H, 1): VPU broadcast-mul + cross-lane reduce, f32 accumulation.
    # TODO(synk): on v5e (no bf16 VPU) a full f32 upcast of the operands is the
    # preferred variant; this single portable kernel keeps the bf16 multiply.
    pos_s = jnp.sum((pos_ref[...] * w).astype(jnp.float32), axis=-1) + bias  # (B_tile,)
    neg_s = jnp.sum((neg_ref[...] * w).astype(jnp.float32), axis=-1) + bias  # (B_tile,)

    # MarginRankingLoss hinge per row: relu(margin - pos + neg).  Mean is taken
    # in the wrapper so tiles stay independent (grid axis can be "parallel").
    hinge = jnp.maximum(MARGIN - pos_s + neg_s, 0.0)                         # (B_tile,)

    # Single lane-dense store: rows = [pos, neg, hinge], B along the lane axis.
    out_ref[...] = jnp.stack([pos_s, neg_s, hinge], axis=0)


def _pick_b_tile(B, H, itemsize):
    """Largest power-of-two B tile that (a) divides B and (b) keeps one input tile
    <= ~2 MiB, so 2 inputs x 2 pipeline buffers fit every generation's VMEM budget."""
    budget = 2 * 1024 * 1024
    cap = max(128, budget // max(1, H * itemsize))
    for t in (1024, 512, 256, 128):
        if t <= cap and B % t == 0:
            return t
    return B  # small / awkward B: single tile (block == full extent, always legal)


def rr_model_forward(pos_hidden, neg_hidden, head_w, head_b):
    """Pallas version of RRModel.forward (pooling='first', LinearHead, 'mr' loss).

    Args:
      pos_hidden, neg_hidden: [B, S, H] backbone `last_hidden_state` (f32 or bf16).
      head_w: [1, H] LinearHead weight (nn.Linear layout: (out_features, in_features)).
      head_b: [1]    LinearHead bias.
    Returns:
      (loss, pos_pair_scores [B,1], neg_pair_scores [B,1]) matching RROutput.
    """
    B, S, H = pos_hidden.shape

    # First-token pooling in the wrapper: reads only the token-0 rows and hands the
    # kernel a contiguous lane-dense (B, H) slab (one big DMA per tile).
    pos_reps = pos_hidden[:, 0, :]
    neg_reps = neg_hidden[:, 0, :]

    hbytes = pos_reps.dtype.itemsize
    b_tile = _pick_b_tile(B, H, hbytes)
    grid = (B // b_tile,)

    cost = pl.CostEstimate(
        flops=4 * B * H + 8 * B,
        transcendentals=0,
        bytes_accessed=2 * B * H * hbytes + (H + 1) * 4 + 3 * B * 4,
    )

    out = pl.pallas_call(
        rr_forward_kernel,
        out_shape=jax.ShapeDtypeStruct((3, B), jnp.float32),
        grid=grid,
        in_specs=[
            pl.BlockSpec((b_tile, H), lambda i: (i, 0)),            # pos reps tile
            pl.BlockSpec((b_tile, H), lambda i: (i, 0)),            # neg reps tile
            pl.BlockSpec((1, H), lambda i: (0, 0)),                 # head weight row
            pl.BlockSpec(memory_space=pltpu.MemorySpace.SMEM),      # head bias scalar
        ],
        out_specs=pl.BlockSpec((3, b_tile), lambda i: (0, i)),      # lane-dense output
        compiler_params=pltpu.CompilerParams(
            dimension_semantics=("parallel",),
            vmem_limit_bytes=32 * 1024 * 1024,
        ),
        cost_estimate=cost,
    )(pos_reps, neg_reps, head_w, head_b)

    pos_scores = out[0, :][:, None]          # [B, 1]
    neg_scores = out[1, :][:, None]          # [B, 1]
    loss = jnp.mean(out[2, :])               # scalar mean hinge (free in XLA)
    return loss, pos_scores, neg_scores


if __name__ == "__main__":
    # Small shapes: batch=2, seq=8, hidden=32.
    B, S, H = 2, 8, 32
    key = jax.random.PRNGKey(0)
    k_pos, k_neg, k_w, k_b = jax.random.split(key, 4)

    # TODO(synk): lm_r (HF PreTrainedModel backbone) is external — stand in with
    # synthetic deterministic last_hidden_state tensors (bf16, as a backbone emits).
    pos_hidden = jax.random.normal(k_pos, (B, S, H), jnp.float32).astype(jnp.bfloat16)
    neg_hidden = jax.random.normal(k_neg, (B, S, H), jnp.float32).astype(jnp.bfloat16)

    # LinearHead(projection_in_dim=H, 1) parameters (nn.Linear-style uniform init).
    bound = 1.0 / (H ** 0.5)
    head_w = jax.random.uniform(k_w, (1, H), jnp.float32, -bound, bound)   # (out, in)
    head_b = jax.random.uniform(k_b, (1,), jnp.float32, -bound, bound)

    fwd = jax.jit(rr_model_forward)
    loss, pos_scores, neg_scores = fwd(pos_hidden, neg_hidden, head_w, head_b)
    jax.block_until_ready((loss, pos_scores, neg_scores))

    # Pure-JAX f32 reference (pool first token, LinearHead, mean hinge).
    pos_reps = pos_hidden[:, 0, :].astype(jnp.float32)
    neg_reps = neg_hidden[:, 0, :].astype(jnp.float32)
    ref_pos = pos_reps @ head_w.T + head_b[0]
    ref_neg = neg_reps @ head_w.T + head_b[0]
    ref_loss = jnp.mean(jnp.maximum(MARGIN - ref_pos + ref_neg, 0.0))

    # bf16 multiply in-kernel vs f32 reference -> small tolerance.
    assert jnp.allclose(pos_scores, ref_pos, atol=1e-2), (pos_scores, ref_pos)
    assert jnp.allclose(neg_scores, ref_neg, atol=1e-2), (neg_scores, ref_neg)
    assert jnp.allclose(loss, ref_loss, atol=1e-2), (loss, ref_loss)

    print("KERNEL_OK")
</pallas_src>

<mosaic_0001>
module attributes {stable_mosaic.version = 11 : i64} {
  func.func @rr_forward_kernel(%arg0: i32, %arg1: memref<2x32xbf16, #tpu.memory_space<vmem>>, %arg2: memref<2x32xbf16, #tpu.memory_space<vmem>>, %arg3: memref<1x32xf32, #tpu.memory_space<vmem>>, %arg4: memref<1xf32, #tpu.memory_space<smem>>, %arg5: memref<3x2xf32, #tpu.memory_space<vmem>>) attributes {dimension_semantics = [#tpu.dimension_semantics<parallel>], iteration_bounds = array<i64: 1>, scalar_prefetch = 0 : i64, scratch_operands = 0 : i64, tpu.core_type = #tpu.core_type<tc>, window_params = [{transform_indices = @transform_0, window_bounds = array<i64: 2, 32>}, {transform_indices = @transform_1, window_bounds = array<i64: 2, 32>}, {pipeline_mode = #tpu.pipeline_mode<synchronous>, transform_indices = @transform_2, window_bounds = array<i64: 1, 32>}, {transform_indices = @transform_3, window_bounds = array<i64: 1>}, {transform_indices = @transform_4, window_bounds = array<i64: 3, 2>}]} {
    %c0 = arith.constant 0 : index
    %c0_0 = arith.constant 0 : index
    %0 = vector.load %arg3[%c0, %c0_0] : memref<1x32xf32, #tpu.memory_space<vmem>>, vector<1x32xf32>
    %1 = arith.truncf %0 : vector<1x32xf32> to vector<1x32xbf16>
    %c0_1 = arith.constant 0 : index
    %2 = memref.load %arg4[%c0_1] : memref<1xf32, #tpu.memory_space<smem>>
    %c0_2 = arith.constant 0 : index
    %c0_3 = arith.constant 0 : index
    %3 = vector.load %arg1[%c0_2, %c0_3] : memref<2x32xbf16, #tpu.memory_space<vmem>>, vector<2x32xbf16>
    %4 = vector.broadcast %1 : vector<1x32xbf16> to vector<2x32xbf16>
    %5 = arith.mulf %3, %4 : vector<2x32xbf16>
    %6 = arith.extf %5 : vector<2x32xbf16> to vector<2x32xf32>
    %cst = arith.constant dense<0.000000e+00> : vector<2xf32>
    %7 = vector.multi_reduction <add>, %6, %cst [1] : vector<2x32xf32> to vector<2xf32>
    %8 = vector.broadcast %2 : f32 to vector<2xf32>
    %9 = arith.addf %7, %8 : vector<2xf32>
    %c0_4 = arith.constant 0 : index
    %c0_5 = arith.constant 0 : index
    %10 = vector.load %arg2[%c0_4, %c0_5] : memref<2x32xbf16, #tpu.memory_space<vmem>>, vector<2x32xbf16>
    %11 = vector.broadcast %1 : vector<1x32xbf16> to vector<2x32xbf16>
    %12 = arith.mulf %10, %11 : vector<2x32xbf16>
    %13 = arith.extf %12 : vector<2x32xbf16> to vector<2x32xf32>
    %cst_6 = arith.constant dense<0.000000e+00> : vector<2xf32>
    %14 = vector.multi_reduction <add>, %13, %cst_6 [1] : vector<2x32xf32> to vector<2xf32>
    %15 = vector.broadcast %2 : f32 to vector<2xf32>
    %16 = arith.addf %14, %15 : vector<2xf32>
    %cst_7 = arith.constant 1.000000e+00 : f32
    %17 = vector.broadcast %cst_7 : f32 to vector<2xf32>
    %18 = arith.subf %17, %9 : vector<2xf32>
    %19 = arith.addf %18, %16 : vector<2xf32>
    %cst_8 = arith.constant 0.000000e+00 : f32
    %20 = vector.broadcast %cst_8 : f32 to vector<2xf32>
    %21 = arith.maximumf %19, %20 : vector<2xf32>
    %22 = vector.shape_cast %9 : vector<2xf32> to vector<1x2xf32>
    %23 = vector.shape_cast %16 : vector<2xf32> to vector<1x2xf32>
    %24 = vector.shape_cast %21 : vector<2xf32> to vector<1x2xf32>
    %25 = tpu.concatenate %22, %23, %24 in 0 : vector<1x2xf32>, vector<1x2xf32>, vector<1x2xf32> -> vector<3x2xf32>
    %c0_9 = arith.constant 0 : index
    %c0_10 = arith.constant 0 : index
    %26 = vector.load %arg5[%c0_9, %c0_10] : memref<3x2xf32, #tpu.memory_space<vmem>>, vector<3x2xf32>
    tpu.vector_store %arg5[%c0_9, %c0_10], %25 {strides = array<i32>} : memref<3x2xf32, #tpu.memory_space<vmem>>, vector<3x2xf32>,
    return
  }
  func.func @transform_0(%arg0: i32) -> (i32, i32) {
    %c0_i32 = arith.constant 0 : i32
    %c0_i32_0 = arith.constant 0 : i32
    return %arg0, %c0_i32 : i32, i32
  }
  func.func @transform_1(%arg0: i32) -> (i32, i32) {
    %c0_i32 = arith.constant 0 : i32
    %c0_i32_0 = arith.constant 0 : i32
    return %arg0, %c0_i32 : i32, i32
  }
  func.func @transform_2(%arg0: i32) -> (i32, i32) {
    %c0_i32 = arith.constant 0 : i32
    %c0_i32_0 = arith.constant 0 : i32
    %c0_i32_1 = arith.constant 0 : i32
    return %c0_i32, %c0_i32_0 : i32, i32
  }
  func.func @transform_3(%arg0: i32) -> i32 {
    %c0_i32 = arith.constant 0 : i32
    %c0_i32_0 = arith.constant 0 : i32
    return %c0_i32 : i32
  }
  func.func @transform_4(%arg0: i32) -> (i32, i32) {
    %c0_i32 = arith.constant 0 : i32
    %c0_i32_0 = arith.constant 0 : i32
    return %c0_i32, %arg0 : i32, i32
  }
}

</mosaic_0001>

<bundles_post_ra>
// kernel: rr_model_forward.1
= control target key start
LH: loop header
LB: loop body
LE: loop exit
PB: predicated region body
PF: predicated region fallthrough
CT: control target
= control target key end

     0   :  { %v25_v0 = vlaneseq  ;;  %vm31_vm0 = vcmask 254976   ;;  %vm67_vm1 = vcmask 1040384   ;;  %vm69_vm2 = vcmask 1041408   ;;  %s117_s2 = inlined_call_operand.vmem [shape: f32[1,32], index: 2, kind: input, shape index: {}]   ;;  %s118_s0 = inlined_call_operand.vmem [shape: bf16[2,32], index: 0, kind: input, shape index: {}]   ;;  %s119_s1 = inlined_call_operand.vmem [shape: bf16[2,32], index: 1, kind: input, shape index: {}]   ;;  %s120_s3 = inlined_call_operand.<no memory space> [shape: f32[1], index: 3, kind: input, shape index: {}]   ;;  %s121_s4 = inlined_call_operand.vmem [shape: f32[3,2], index: 4, kind: output, shape index: {}]  }
   0x1   :  { %v18_v1 = vld [vmem:[%s117_s2] sm:$0x1]  ;;  %v35_v17 = vstv %s120_s3  ;;  %vm71_vm3 = vcmask 10240  }
   0x2   :  { %v19_v2 = vpack.c.bf16 %v18_v1, %v18_v1  ;;  %v26_v3 = vshrl.u32 %v25_v0, 7  ;;  %v49_v4 = vand.u32 127, %v25_v0  ;;  %v21_v8 = vld [vmem:[%s118_s0] sm:$0x1] }
   0x3   :  { %v37_v9 = vld [vmem:[%s119_s1] sm:$0x1] }
   0x4   :  { %v23_v5 = vpack.i.b16 %v19_v2, %v19_v2  ;;  %v27_v6 = vsub.s32 0, %v26_v3  ;;  %v52_v7 = vsub.s32 %v49_v4, %v26_v3 }
   0x6   :  { %v28_v10 = vrot.slane %v23_v5, %v27_v6 }
   0x8   :  { %v29_v11 = vmul.bf16 %v28_v10, %v21_v8  ;;  %v38_v12 = vmul.bf16 %v37_v9, %v28_v10 }
   0xa   :  { %v30_v13 = vunpack.c.l.bf16 %v29_v11  ;;  %v39_v14 = vunpack.c.l.bf16 %v38_v12 }
   0xc   :  { %v32_v15 = vsel %vm31_vm0, %v30_v13, 0.0  ;;  %v40_v16 = vsel %vm31_vm0, %v39_v14, 0.0 }
   0xd   :  { %33 = vadd.xlane.f32.xlu0 %v32_v15 }
  0x11   :  { %41 = vadd.xlane.f32.xlu0 %v40_v16 }
  0x9a   :  { %v34_v18 = vpop.xlane.xlu0 %33 }
  0x9b   :  { %v36_v19 = vadd.f32 %v35_v17, %v34_v18 }
  0x9d   :  { %v44_v21 = vsub.f32 1.0, %v36_v19  ;;  %v53_v26 = vrot.slane %v36_v19, %v52_v7 }
  0x9e   :  { %v42_v20 = vpop.xlane.xlu0 %41 }
  0x9f   :  { %v43_v22 = vadd.f32 %v42_v20, %v35_v17 }
  0xa1   :  { %v45_v23 = vadd.f32 %v44_v21, %v43_v22  ;;  %v59_v24 = vrot.slane %v43_v22, %v52_v7 }
  0xa3   :  { %v46_v25 = vmax.f32 %v45_v23, 0.0  ;;  %v68_v28 = vsel %vm67_vm1, %v53_v26, %v59_v24 }
  0xa5   :  { %v65_v27 = vrot.slane %v46_v25, %v52_v7 }
  0xa7   :  { %v70_v29 = vsel %vm69_vm2, %v68_v28, %v65_v27 }
  0xa8   :  { %72 = vst.msk [vmem:[%s121_s4] sm:$0x7] %vm71_vm3, %v70_v29 }

</bundles_post_ra>
